<compile_context>
chip_gen: v5e
topology: v5e:2x2
jax: 0.10.0
libtpu: 0.0.40
codegen_flags: <defaults>
</compile_context>

<pallas_src>
from collections import namedtuple

import jax
import jax.numpy as jnp
from jax import lax
from jax.experimental import pallas as pl
from jax.experimental.pallas import tpu as pltpu

TokenPrediction = namedtuple(
    "TokenPrediction",
    ("scores", "aligned_tokens", "utterance_attention_results", "decoder_state"),
)
AttentionResult = namedtuple("AttentionResult", ("scores", "distribution", "vector"))


def _round_up(x, m):
    return ((x + m - 1) // m) * m


# ---------------------------------------------------------------------------
# Kernel 1: single-shot prologue (attention + tanh state-transform +
#           snippet / schema scoring).  Runs once; everything here is
#           independent of the vocabulary tile index.
# ---------------------------------------------------------------------------
def _prologue_kernel(
    dec_ref,          # (1, D)       f32 decoder state
    hid_ref,          # (L, A)       f32 input hidden states (keys == values)
    wq_ref,           # (D, A)       attention query transform (bf16 storage)
    wst_d_ref,        # (D, D)       state-transform weights, decoder-state rows
    wst_a_ref,        # (A, D)       state-transform weights, attention-vector rows
    wsnip_ref,        # (D, P)       snippet scorer weights
    snipT_ref,        # (P, Ns_pad)  snippet embeddings, pre-transposed
    wschema_ref,      # (D, S)       schema-token scorer weights
    schemaT_ref,      # (S, Nc_pad)  schema states, pre-transposed
    inter_out,        # (1, D)       intermediate state (vocab-weight dtype)
    snip_out,         # (1, Ns_pad)  f32
    schema_out,       # (1, Nc_pad)  f32
    attn_scores_out,  # (1, L)       f32
    attn_dist_out,    # (1, L)       f32
    attn_vec_out,     # (1, A)       f32
):
    f32 = jnp.float32
    dec = dec_ref[...].astype(f32)
    hid = hid_ref[...].astype(f32)

    # --- Attention(decoder_state, input_hidden_states) -----------------------
    query = jnp.dot(dec, wq_ref[...].astype(f32), preferred_element_type=f32)   # (1, A)
    # scores = query @ hid^T  (matmul with transposed RHS; hid never relaid-out
    # beyond the MXU's native transposed-operand path)
    scores = lax.dot_general(
        query, hid,
        dimension_numbers=(((1,), (1,)), ((), ())),
        preferred_element_type=f32,
    )                                                                            # (1, L)
    m = jnp.max(scores, axis=-1, keepdims=True)
    e = jnp.exp(scores - m)
    dist = e / jnp.sum(e, axis=-1, keepdims=True)   # exact softmax (no approx recip)
    ctx = jnp.dot(dist, hid, preferred_element_type=f32)                         # (1, A)

    # --- intermediate_state = tanh(linear([dec; ctx], W_state_transform)) ----
    # concat-then-matmul == split matmul: [dec ctx] @ [Wd; Wa]
    inter = jnp.tanh(
        jnp.dot(dec, wst_d_ref[...].astype(f32), preferred_element_type=f32)
        + jnp.dot(ctx, wst_a_ref[...].astype(f32), preferred_element_type=f32)
    )                                                                            # (1, D)
    # TODO(synk): F.dropout(intermediate_state, dropout_amount) is the identity
    # on the inference path (p=0.0); training-time dropout is not reproduced.

    # --- snippet scores: (inter @ W_snip) @ snippets^T ------------------------
    snip_scorer = jnp.dot(inter, wsnip_ref[...].astype(f32),
                          preferred_element_type=f32)                            # (1, P)
    snip_out[...] = jnp.dot(snip_scorer, snipT_ref[...].astype(f32),
                            preferred_element_type=f32)

    # --- schema-token scores: same pattern ------------------------------------
    schema_scorer = jnp.dot(inter, wschema_ref[...].astype(f32),
                            preferred_element_type=f32)                          # (1, S)
    schema_out[...] = jnp.dot(schema_scorer, schemaT_ref[...].astype(f32),
                              preferred_element_type=f32)

    inter_out[...] = inter.astype(inter_out.dtype)
    attn_scores_out[...] = scores
    attn_dist_out[...] = dist
    attn_vec_out[...] = ctx


# ---------------------------------------------------------------------------
# Kernel 2: vocabulary score stream.  Pure matvec over lane-dense (D, TV)
#           weight tiles; DMA-bound, pipelined over the grid.
# ---------------------------------------------------------------------------
def _vocab_kernel(inter_ref, wv_ref, bv_ref, out_ref):
    out_ref[...] = (
        jnp.dot(inter_ref[...], wv_ref[...], preferred_element_type=jnp.float32)
        + bv_ref[...].astype(jnp.float32)
    )


def schema_token_predictor_forward(
    decoder_state,        # (D,)     activation dtype
    input_hidden_states,  # (L, A)   activation dtype
    snippet_embeddings,   # (Ns, P)  activation dtype
    schema_states,        # (Nc, S)  activation dtype
    weights,              # dict of parameters (stored bf16)
    vocab_tokens,
    snippet_names,
    schema_column_names,
):
    # TODO(synk): the torch module's `use_snippets=False` / empty-snippet branch
    # is not specialized here; this wrapper assumes snippets are present.
    D = decoder_state.shape[0]
    L, A = input_hidden_states.shape
    Ns, P = snippet_embeddings.shape
    Nc, S = schema_states.shape
    wv = weights["vocabulary_weights"]          # (D, V)
    V = wv.shape[1]

    Ns_pad = _round_up(Ns, 128)
    Nc_pad = _round_up(Nc, 128)

    dec2d = decoder_state.reshape(1, D).astype(jnp.float32)
    hid = input_hidden_states.astype(jnp.float32)
    w_st = weights["state_transform_weights"]   # (D + A, D)
    w_st_d, w_st_a = w_st[:D, :], w_st[D:, :]
    # Pre-transpose so in-kernel contractions are MXU-native; pad the N axis to
    # 128 lanes so the score stores are unmasked.
    snipT = jnp.pad(snippet_embeddings.astype(jnp.float32).T,
                    ((0, 0), (0, Ns_pad - Ns)))                     # (P, Ns_pad)
    schemaT = jnp.pad(schema_states.astype(jnp.float32).T,
                      ((0, 0), (0, Nc_pad - Nc)))                   # (S, Nc_pad)

    # ---- Kernel 1: one-shot prologue (no grid; whole-array VMEM blocks) ----
    (inter, snip_scores, schema_scores, a_scores, a_dist, a_vec) = pl.pallas_call(
        _prologue_kernel,
        out_shape=[
            jax.ShapeDtypeStruct((1, D), wv.dtype),        # intermediate state
            jax.ShapeDtypeStruct((1, Ns_pad), jnp.float32),
            jax.ShapeDtypeStruct((1, Nc_pad), jnp.float32),
            jax.ShapeDtypeStruct((1, L), jnp.float32),
            jax.ShapeDtypeStruct((1, L), jnp.float32),
            jax.ShapeDtypeStruct((1, A), jnp.float32),
        ],
    )(dec2d, hid, weights["attention_query_weights"], w_st_d, w_st_a,
      weights["snippet_weights"], snipT, weights["schema_token_weights"], schemaT)

    # ---- Kernel 2: vocabulary scores, tiled over V --------------------------
    # Size TV by DMA bytes (~1 MiB bf16 weight tiles), capped so double-buffered
    # tiles stay well inside every generation's VMEM (v7x: 64 MiB physical).
    itemsize = jnp.dtype(wv.dtype).itemsize
    tv_by_bytes = _round_up(max(512, (1 << 20) // max(1, itemsize * D)), 128)
    tv_vmem_cap = max(128, ((12 * (1 << 20)) // max(1, itemsize * D)) // 128 * 128)
    TV = min(tv_by_bytes, _round_up(V, 128), tv_vmem_cap)
    V_pad = _round_up(V, TV)
    nj = V_pad // TV

    wv_p = jnp.pad(wv, ((0, 0), (0, V_pad - V)))
    bv_p = jnp.pad(weights["vocabulary_biases"].reshape(1, V),
                   ((0, 0), (0, V_pad - V)))

    # VMEM budget: double-buffered weight/bias/output tiles + resident inter.
    vmem_needed = 2 * (D * TV * itemsize + TV * itemsize + TV * 4) + 2 * D * itemsize
    vmem_limit = int(min(48 * (1 << 20), max(32 * (1 << 20), 2 * vmem_needed)))

    vocab_scores = pl.pallas_call(
        _vocab_kernel,
        out_shape=jax.ShapeDtypeStruct((1, V_pad), jnp.float32),
        grid=(nj,),
        in_specs=[
            pl.BlockSpec((1, D), lambda j: (0, 0)),     # resident intermediate state
            pl.BlockSpec((D, TV), lambda j: (0, j)),    # vocab weights, streamed over V
            pl.BlockSpec((1, TV), lambda j: (0, j)),    # vocab biases,  streamed over V
        ],
        out_specs=pl.BlockSpec((1, TV), lambda j: (0, j)),
        compiler_params=pltpu.CompilerParams(
            dimension_semantics=("parallel",),
            vmem_limit_bytes=vmem_limit,
        ),
        cost_estimate=pl.CostEstimate(
            flops=int(2 * D * V_pad),
            transcendentals=0,
            bytes_accessed=int(D * V_pad * itemsize + V_pad * itemsize
                               + V_pad * 4 + D * itemsize),
        ),
    )(inter, wv_p, bv_p)

    # torch: final_scores = cat([vocab (V,1), snippet (Ns,1), schema (Nc,1)]).squeeze()
    final_scores = jnp.concatenate(
        [vocab_scores[0, :V], snip_scores[0, :Ns], schema_scores[0, :Nc]], axis=0
    )
    aligned_tokens = list(vocab_tokens) + list(snippet_names) + list(schema_column_names)
    attn_results = AttentionResult(
        scores=a_scores.reshape(L, 1),        # (num_keys, 1), matches torch
        distribution=a_dist.reshape(L, 1),    # (num_keys, 1)
        vector=a_vec.reshape(A),              # (A,)
    )
    return TokenPrediction(final_scores, aligned_tokens, attn_results, decoder_state)


def _reference_forward(decoder_state, hid, snips, schema, weights):
    """Pure-JAX f32 reference mirroring the torch code, for verification."""
    f32 = jnp.float32
    w = {k: v.astype(f32) for k, v in weights.items()}
    D = decoder_state.shape[0]
    dec = decoder_state.reshape(1, D).astype(f32)
    q_t = dec @ w["attention_query_weights"]                       # (1, A)
    scores = q_t @ hid.astype(f32).T                               # (1, L)
    dist = jax.nn.softmax(scores, axis=-1)
    ctx = dist @ hid.astype(f32)                                   # (1, A)
    state_and_attn = jnp.concatenate([dec, ctx], axis=1)           # (1, D + A)
    inter = jnp.tanh(state_and_attn @ w["state_transform_weights"])
    vocab = inter @ w["vocabulary_weights"] + w["vocabulary_biases"]
    snip = (inter @ w["snippet_weights"]) @ snips.astype(f32).T
    sch = (inter @ w["schema_token_weights"]) @ schema.astype(f32).T
    return jnp.concatenate([vocab[0], snip[0], sch[0]], axis=0)


if __name__ == "__main__":
    # Small, forward-consistent sizes.
    D = 32   # decoder_state_size
    A = 32   # utterance_attention_key_size
    S = 32   # schema_attention_key_size
    P = 32   # snippet_size
    V = 8    # vocabulary size
    L = 8    # number of input hidden states
    NS = 4   # number of snippets
    NC = 8   # number of schema tokens

    key = jax.random.PRNGKey(0)
    ks = jax.random.split(key, 10)
    scale = 0.1
    wdt = jnp.bfloat16   # weights stored/shipped in bf16 (vocab stream is HBM-byte bound)
    weights = {
        "attention_query_weights": (scale * jax.random.normal(ks[0], (D, A), jnp.float32)).astype(wdt),
        "state_transform_weights": (scale * jax.random.normal(ks[1], (D + A, D), jnp.float32)).astype(wdt),
        "vocabulary_weights": (scale * jax.random.normal(ks[2], (D, V), jnp.float32)).astype(wdt),
        "vocabulary_biases": (scale * jax.random.normal(ks[3], (V,), jnp.float32)).astype(wdt),
        "snippet_weights": (scale * jax.random.normal(ks[4], (D, P), jnp.float32)).astype(wdt),
        "schema_token_weights": (scale * jax.random.normal(ks[5], (D, S), jnp.float32)).astype(wdt),
    }

    decoder_state = jax.random.normal(ks[6], (D,), jnp.float32)
    input_hidden_states = jax.random.normal(ks[7], (L, A), jnp.float32)
    snippet_embeddings = jax.random.normal(ks[8], (NS, P), jnp.float32)
    schema_states = jax.random.normal(ks[9], (NC, S), jnp.float32)

    vocab_tokens = [f"vocab_{i}" for i in range(V)]
    snippet_names = [f"snippet_{i}" for i in range(NS)]
    schema_column_names = [f"column_{i}" for i in range(NC)]

    pred = schema_token_predictor_forward(
        decoder_state,
        input_hidden_states,
        snippet_embeddings,
        schema_states,
        weights,
        vocab_tokens,
        snippet_names,
        schema_column_names,
    )
    jax.block_until_ready(pred.scores)

    ref = _reference_forward(
        decoder_state, input_hidden_states, snippet_embeddings, schema_states, weights
    )
    assert pred.scores.shape == (V + NS + NC,)
    assert len(pred.aligned_tokens) == V + NS + NC
    assert pred.utterance_attention_results.scores.shape == (L, 1)
    assert pred.utterance_attention_results.distribution.shape == (L, 1)
    assert pred.utterance_attention_results.vector.shape == (A,)
    # Prologue is f32; residual error is only bf16 rounding of inter / vocab weights.
    assert jnp.allclose(pred.scores, ref, rtol=5e-2, atol=5e-2), float(
        jnp.max(jnp.abs(pred.scores - ref))
    )
    print("KERNEL_OK")
</pallas_src>

<mosaic_0001>
module attributes {stable_mosaic.version = 11 : i64} {
  func.func @_prologue_kernel(%arg0: memref<1x32xf32, #tpu.memory_space<vmem>>, %arg1: memref<8x32xf32, #tpu.memory_space<vmem>>, %arg2: memref<32x32xbf16, #tpu.memory_space<vmem>>, %arg3: memref<32x32xbf16, #tpu.memory_space<vmem>>, %arg4: memref<32x32xbf16, #tpu.memory_space<vmem>>, %arg5: memref<32x32xbf16, #tpu.memory_space<vmem>>, %arg6: memref<32x128xf32, #tpu.memory_space<vmem>>, %arg7: memref<32x32xbf16, #tpu.memory_space<vmem>>, %arg8: memref<32x128xf32, #tpu.memory_space<vmem>>, %arg9: memref<1x32xbf16, #tpu.memory_space<vmem>>, %arg10: memref<1x128xf32, #tpu.memory_space<vmem>>, %arg11: memref<1x128xf32, #tpu.memory_space<vmem>>, %arg12: memref<1x8xf32, #tpu.memory_space<vmem>>, %arg13: memref<1x8xf32, #tpu.memory_space<vmem>>, %arg14: memref<1x32xf32, #tpu.memory_space<vmem>>) attributes {dimension_semantics = [], scalar_prefetch = 0 : i64, scratch_operands = 0 : i64, tpu.core_type = #tpu.core_type<tc>} {
    %c0 = arith.constant 0 : index
    %c0_0 = arith.constant 0 : index
    %0 = vector.load %arg0[%c0, %c0_0] : memref<1x32xf32, #tpu.memory_space<vmem>>, vector<1x32xf32>
    %c0_1 = arith.constant 0 : index
    %c0_2 = arith.constant 0 : index
    %1 = vector.load %arg1[%c0_1, %c0_2] : memref<8x32xf32, #tpu.memory_space<vmem>>, vector<8x32xf32>
    %c0_3 = arith.constant 0 : index
    %c0_4 = arith.constant 0 : index
    %2 = vector.load %arg2[%c0_3, %c0_4] : memref<32x32xbf16, #tpu.memory_space<vmem>>, vector<32x32xbf16>
    %3 = arith.extf %2 : vector<32x32xbf16> to vector<32x32xf32>
    %cst = arith.constant dense<0.000000e+00> : vector<1x32xf32>
    %4 = tpu.matmul %0, %3, %cst {dimension_numbers = #tpu.dot_dimension_numbers<[1], [0], [0], [1], [0, 0, 1, 1], [], []>} : vector<1x32xf32>, vector<32x32xf32>, vector<1x32xf32> -> vector<1x32xf32>
    %cst_5 = arith.constant dense<0.000000e+00> : vector<1x8xf32>
    %5 = tpu.matmul %4, %1, %cst_5 {dimension_numbers = #tpu.dot_dimension_numbers<[1], [1], [0], [0], [0, 0, 1, 0], [], []>} : vector<1x32xf32>, vector<8x32xf32>, vector<1x8xf32> -> vector<1x8xf32>
    %cst_6 = arith.constant dense<0xFF800000> : vector<1xf32>
    %6 = vector.multi_reduction <maximumf>, %5, %cst_6 [1] : vector<1x8xf32> to vector<1xf32>
    %7 = vector.shape_cast %6 : vector<1xf32> to vector<1x1xf32>
    %8 = vector.broadcast %7 : vector<1x1xf32> to vector<1x8xf32>
    %9 = arith.subf %5, %8 : vector<1x8xf32>
    %10 = math.exp %9 : vector<1x8xf32>
    %cst_7 = arith.constant dense<0.000000e+00> : vector<1xf32>
    %11 = vector.multi_reduction <add>, %10, %cst_7 [1] : vector<1x8xf32> to vector<1xf32>
    %12 = vector.shape_cast %11 : vector<1xf32> to vector<1x1xf32>
    %13 = vector.broadcast %12 : vector<1x1xf32> to vector<1x8xf32>
    %14 = arith.divf %10, %13 : vector<1x8xf32>
    %cst_8 = arith.constant dense<0.000000e+00> : vector<1x32xf32>
    %15 = tpu.matmul %14, %1, %cst_8 {dimension_numbers = #tpu.dot_dimension_numbers<[1], [0], [0], [1], [0, 0, 1, 1], [], []>} : vector<1x8xf32>, vector<8x32xf32>, vector<1x32xf32> -> vector<1x32xf32>
    %c0_9 = arith.constant 0 : index
    %c0_10 = arith.constant 0 : index
    %16 = vector.load %arg3[%c0_9, %c0_10] : memref<32x32xbf16, #tpu.memory_space<vmem>>, vector<32x32xbf16>
    %17 = arith.extf %16 : vector<32x32xbf16> to vector<32x32xf32>
    %cst_11 = arith.constant dense<0.000000e+00> : vector<1x32xf32>
    %18 = tpu.matmul %0, %17, %cst_11 {dimension_numbers = #tpu.dot_dimension_numbers<[1], [0], [0], [1], [0, 0, 1, 1], [], []>} : vector<1x32xf32>, vector<32x32xf32>, vector<1x32xf32> -> vector<1x32xf32>
    %c0_12 = arith.constant 0 : index
    %c0_13 = arith.constant 0 : index
    %19 = vector.load %arg4[%c0_12, %c0_13] : memref<32x32xbf16, #tpu.memory_space<vmem>>, vector<32x32xbf16>
    %20 = arith.extf %19 : vector<32x32xbf16> to vector<32x32xf32>
    %cst_14 = arith.constant dense<0.000000e+00> : vector<1x32xf32>
    %21 = tpu.matmul %15, %20, %cst_14 {dimension_numbers = #tpu.dot_dimension_numbers<[1], [0], [0], [1], [0, 0, 1, 1], [], []>} : vector<1x32xf32>, vector<32x32xf32>, vector<1x32xf32> -> vector<1x32xf32>
    %22 = arith.addf %18, %21 : vector<1x32xf32>
    %23 = math.tanh %22 : vector<1x32xf32>
    %c0_15 = arith.constant 0 : index
    %c0_16 = arith.constant 0 : index
    %24 = vector.load %arg5[%c0_15, %c0_16] : memref<32x32xbf16, #tpu.memory_space<vmem>>, vector<32x32xbf16>
    %25 = arith.extf %24 : vector<32x32xbf16> to vector<32x32xf32>
    %cst_17 = arith.constant dense<0.000000e+00> : vector<1x32xf32>
    %26 = tpu.matmul %23, %25, %cst_17 {dimension_numbers = #tpu.dot_dimension_numbers<[1], [0], [0], [1], [0, 0, 1, 1], [], []>} : vector<1x32xf32>, vector<32x32xf32>, vector<1x32xf32> -> vector<1x32xf32>
    %c0_18 = arith.constant 0 : index
    %c0_19 = arith.constant 0 : index
    %27 = vector.load %arg6[%c0_18, %c0_19] : memref<32x128xf32, #tpu.memory_space<vmem>>, vector<32x128xf32>
    %cst_20 = arith.constant dense<0.000000e+00> : vector<1x128xf32>
    %28 = tpu.matmul %26, %27, %cst_20 {dimension_numbers = #tpu.dot_dimension_numbers<[1], [0], [0], [1], [0, 0, 1, 1], [], []>} : vector<1x32xf32>, vector<32x128xf32>, vector<1x128xf32> -> vector<1x128xf32>
    %c0_21 = arith.constant 0 : index
    %c0_22 = arith.constant 0 : index
    %29 = vector.load %arg10[%c0_21, %c0_22] : memref<1x128xf32, #tpu.memory_space<vmem>>, vector<1x128xf32>
    tpu.vector_store %arg10[%c0_21, %c0_22], %28 {strides = array<i32>} : memref<1x128xf32, #tpu.memory_space<vmem>>, vector<1x128xf32>,
    %c0_23 = arith.constant 0 : index
    %c0_24 = arith.constant 0 : index
    %30 = vector.load %arg7[%c0_23, %c0_24] : memref<32x32xbf16, #tpu.memory_space<vmem>>, vector<32x32xbf16>
    %31 = arith.extf %30 : vector<32x32xbf16> to vector<32x32xf32>
    %cst_25 = arith.constant dense<0.000000e+00> : vector<1x32xf32>
    %32 = tpu.matmul %23, %31, %cst_25 {dimension_numbers = #tpu.dot_dimension_numbers<[1], [0], [0], [1], [0, 0, 1, 1], [], []>} : vector<1x32xf32>, vector<32x32xf32>, vector<1x32xf32> -> vector<1x32xf32>
    %c0_26 = arith.constant 0 : index
    %c0_27 = arith.constant 0 : index
    %33 = vector.load %arg8[%c0_26, %c0_27] : memref<32x128xf32, #tpu.memory_space<vmem>>, vector<32x128xf32>
    %cst_28 = arith.constant dense<0.000000e+00> : vector<1x128xf32>
    %34 = tpu.matmul %32, %33, %cst_28 {dimension_numbers = #tpu.dot_dimension_numbers<[1], [0], [0], [1], [0, 0, 1, 1], [], []>} : vector<1x32xf32>, vector<32x128xf32>, vector<1x128xf32> -> vector<1x128xf32>
    %c0_29 = arith.constant 0 : index
    %c0_30 = arith.constant 0 : index
    %35 = vector.load %arg11[%c0_29, %c0_30] : memref<1x128xf32, #tpu.memory_space<vmem>>, vector<1x128xf32>
    tpu.vector_store %arg11[%c0_29, %c0_30], %34 {strides = array<i32>} : memref<1x128xf32, #tpu.memory_space<vmem>>, vector<1x128xf32>,
    %36 = arith.truncf %23 : vector<1x32xf32> to vector<1x32xbf16>
    %c0_31 = arith.constant 0 : index
    %c0_32 = arith.constant 0 : index
    %37 = vector.load %arg9[%c0_31, %c0_32] : memref<1x32xbf16, #tpu.memory_space<vmem>>, vector<1x32xbf16>
    tpu.vector_store %arg9[%c0_31, %c0_32], %36 {strides = array<i32>} : memref<1x32xbf16, #tpu.memory_space<vmem>>, vector<1x32xbf16>,
    %c0_33 = arith.constant 0 : index
    %c0_34 = arith.constant 0 : index
    %38 = vector.load %arg12[%c0_33, %c0_34] : memref<1x8xf32, #tpu.memory_space<vmem>>, vector<1x8xf32>
    tpu.vector_store %arg12[%c0_33, %c0_34], %5 {strides = array<i32>} : memref<1x8xf32, #tpu.memory_space<vmem>>, vector<1x8xf32>,
    %c0_35 = arith.constant 0 : index
    %c0_36 = arith.constant 0 : index
    %39 = vector.load %arg13[%c0_35, %c0_36] : memref<1x8xf32, #tpu.memory_space<vmem>>, vector<1x8xf32>
    tpu.vector_store %arg13[%c0_35, %c0_36], %14 {strides = array<i32>} : memref<1x8xf32, #tpu.memory_space<vmem>>, vector<1x8xf32>,
    %c0_37 = arith.constant 0 : index
    %c0_38 = arith.constant 0 : index
    %40 = vector.load %arg14[%c0_37, %c0_38] : memref<1x32xf32, #tpu.memory_space<vmem>>, vector<1x32xf32>
    tpu.vector_store %arg14[%c0_37, %c0_38], %15 {strides = array<i32>} : memref<1x32xf32, #tpu.memory_space<vmem>>, vector<1x32xf32>,
    return
  }
}

</mosaic_0001>

<bundles_post_ra>
// kernel: tpu_custom_call.1
= control target key start
LH: loop header
LB: loop body
LE: loop exit
PB: predicated region body
PF: predicated region fallthrough
CT: control target
= control target key end

     0   :  { %20 = vsyncpa [#allocation3], 0  ;;  %s1199_s0 = inlined_call_operand.hbm [shape: f32[1,32], index: 0, kind: input, shape index: {}]   ;;  %s1200_s1 = inlined_call_operand.hbm [shape: f32[8,32], index: 1, kind: input, shape index: {}]   ;;  %s1201_s2 = inlined_call_operand.hbm [shape: bf16[32,32], index: 2, kind: input, shape index: {}]   ;;  %s1202_s3 = inlined_call_operand.hbm [shape: bf16[32,32], index: 3, kind: input, shape index: {}]   ;;  %s1203_s4 = inlined_call_operand.hbm [shape: bf16[32,32], index: 4, kind: input, shape index: {}]   ;;  %s1204_s5 = inlined_call_operand.hbm [shape: bf16[32,32], index: 5, kind: input, shape index: {}]   ;;  %s1205_s6 = inlined_call_operand.hbm [shape: f32[32,128], index: 6, kind: input, shape index: {}]   ;;  %s1206_s7 = inlined_call_operand.hbm [shape: bf16[32,32], index: 7, kind: input, shape index: {}]   ;;  %s1207_s8 = inlined_call_operand.hbm [shape: f32[32,128], index: 8, kind: input, shape index: {}]   ;;  %s1208_s9 = inlined_call_operand.hbm [shape: bf16[1,32], index: 9, kind: output, shape index: {0}]   ;;  %s1209_s10 = inlined_call_operand.hbm [shape: f32[1,128], index: 10, kind: output, shape index: {1}]   ;;  %s1210_s11 = inlined_call_operand.hbm [shape: f32[1,128], index: 11, kind: output, shape index: {2}]   ;;  %s1211_s12 = inlined_call_operand.hbm [shape: f32[1,8], index: 12, kind: output, shape index: {3}]   ;;  %s1212_s13 = inlined_call_operand.hbm [shape: f32[1,8], index: 13, kind: output, shape index: {4}]   ;;  %s1213_s14 = inlined_call_operand.hbm [shape: f32[1,32], index: 14, kind: output, shape index: {5}]  }
   0x1   :  { %21 = vsyncpa [#allocation6], 0 }
   0x2   :  { %22 = vsyncpa [#allocation9], 0 }
   0x3   :  { %23 = vsyncpa [#allocation12], 0 }
   0x4   :  { %24 = vsyncpa [#allocation15], 0 }
   0x5   :  { %25 = vsyncpa [#allocation4], 0 }
   0x6   :  { %26 = vsyncpa [#allocation19], 0 }
   0x7   :  { %27 = vsyncpa [#allocation22], 0  ;;  %s45_s15 = sshll.u32 %s1200_s1, 4  ;;  %s46_s15 = int_to_ptr.hbm [resolvable:$true] %s45_s15 }
   0x8   :  { %28 = vsyncpa [#allocation25], 0  ;;  %s1030_s16 = smov [#allocation5]   ;;  %s68_s20 = sshll.u32 %s1202_s3, 4  ;;  %s69_s20 = int_to_ptr.hbm [resolvable:$true] %s68_s20 }
   0x9   :  { %s47_s17 = sshll.u32 %s1030_s16, 4  ;;  %s1031_s21 = smov [#allocation8]   ;;  %s48_s17 = int_to_ptr.vmem [resolvable:$true] %s47_s17 }
   0xa   :  { %50 = dma.hbm_to_vmem [thread:$0]  %s46_s15, 128, %s48_s17, [#allocation6]  }
   0xb   :  { %s70_s22 = sshll.u32 %s1031_s21, 4  ;;  %s94_s25 = sshll.u32 %s1204_s5, 4  ;;  %s71_s22 = int_to_ptr.vmem [resolvable:$true] %s70_s22  ;;  %s95_s25 = int_to_ptr.hbm [resolvable:$true] %s94_s25 }
   0xc   :  { %s1032_s1 = smov 64   ;;  %s1033_s26 = smov 4  }
   0xd   :  { %76 = dma.hbm_to_vmem [thread:$0]  %s69_s20, 256, %s71_s22, [#allocation9], %s1032_s1, %s1032_s1, %s1033_s26  }
   0xe   :  { %s120_s29 = sshll.u32 %s1206_s7, 4  ;;  %s1034_s3 = smov [#allocation11]   ;;  %s121_s29 = int_to_ptr.hbm [resolvable:$true] %s120_s29 }
   0xf   :  { %s96_s30 = sshll.u32 %s1034_s3, 4  ;;  %s1035_s5 = smov [#allocation14]   ;;  %s97_s30 = int_to_ptr.vmem [resolvable:$true] %s96_s30 }
  0x10   :  { %102 = dma.hbm_to_vmem [thread:$0]  %s95_s25, 256, %s97_s30, [#allocation12], %s1032_s1, %s1032_s1, %s1033_s26  }
  0x11   :  { %s122_s15 = sshll.u32 %s1035_s5, 4  ;;  %s34_s18 = sshll.u32 %s1199_s0, 4  ;;  %s123_s15 = int_to_ptr.vmem [resolvable:$true] %s122_s15  ;;  %s35_s18 = int_to_ptr.hbm [resolvable:$true] %s34_s18 }
  0x12   :  { %128 = dma.hbm_to_vmem [thread:$0]  %s121_s29, 256, %s123_s15, [#allocation15], %s1032_s1, %s1032_s1, %s1033_s26  }
  0x13   :  { %s55_s20 = sshll.u32 %s1201_s2, 4  ;;  %s1036_s21 = smov [#allocation2]   ;;  %s56_s20 = int_to_ptr.hbm [resolvable:$true] %s55_s20 }
  0x14   :  { %s36_s22 = sshll.u32 %s1036_s21, 4  ;;  %s1037_s23 = smov [#allocation7]   ;;  %s37_s22 = int_to_ptr.vmem [resolvable:$true] %s36_s22 }
  0x15   :  { %39 = dma.hbm_to_vmem [thread:$0]  %s35_s18, 16, %s37_s22, [#allocation3]  }
  0x16   :  { %s57_s24 = sshll.u32 %s1037_s23, 4  ;;  %s81_s0 = sshll.u32 %s1203_s4, 4  ;;  %s58_s24 = int_to_ptr.vmem [resolvable:$true] %s57_s24  ;;  %s82_s0 = int_to_ptr.hbm [resolvable:$true] %s81_s0 }
  0x17   :  { %63 = dma.hbm_to_vmem [thread:$0]  %s56_s20, 256, %s58_s24, [#allocation6], %s1032_s1, %s1032_s1, %s1033_s26  }
  0x18   :  { %s107_s2 = sshll.u32 %s1205_s6, 4  ;;  %s1038_s3 = smov [#allocation10]   ;;  %s108_s2 = int_to_ptr.hbm [resolvable:$true] %s107_s2 }
  0x19   :  { %s83_s30 = sshll.u32 %s1038_s3, 4  ;;  %s1039_s5 = smov [#allocation13]   ;;  %s84_s30 = int_to_ptr.vmem [resolvable:$true] %s83_s30 }
  0x1a   :  { %89 = dma.hbm_to_vmem [thread:$0]  %s82_s0, 256, %s84_s30, [#allocation9], %s1032_s1, %s1032_s1, %s1033_s26  }
  0x1b   :  { %s109_s4 = sshll.u32 %s1039_s5, 4  ;;  %s1040_s15 = smov 128   ;;  %s110_s4 = int_to_ptr.vmem [resolvable:$true] %s109_s4 }
  0x1c   :  { %s1041_s16 = smov 8   ;;  %s133_s7 = sshll.u32 %s1207_s8, 4  ;;  %s134_s7 = int_to_ptr.hbm [resolvable:$true] %s133_s7 }
  0x1d   :  { %115 = dma.hbm_to_vmem [thread:$0]  %s108_s2, 512, %s110_s4, [#allocation12], %s1040_s15, %s1040_s15, %s1041_s16  }
  0x1e   :  { %s1042_s6 = smov [#allocation16]  }
  0x1f   :  { %s135_s19 = sshll.u32 %s1042_s6, 4  ;;  %s136_s19 = int_to_ptr.vmem [resolvable:$true] %s135_s19 }
  0x20   :  { %141 = dma.hbm_to_vmem [thread:$0]  %s134_s7, 512, %s136_s19, [#allocation15], %s1040_s15, %s1040_s15, %s1041_s16  }
  0x21   :  { %1012 = dma.done.wait [#allocation3], 16  }
  0x22   :  { %1013 = vsyncadd [#allocation3], 4294967280 }
  0x23   :  { %1014 = dma.done.wait [#allocation6], 384  }
  0x24   :  { %1015 = vsyncadd [#allocation6], 4294966912 }
  0x25   :  { %1016 = dma.done.wait [#allocation9], 512  }
  0x26   :  { %1017 = vsyncadd [#allocation9], 4294966784 }
  0x27   :  { %1018 = dma.done.wait [#allocation12], 768  }
  0x28   :  { %1019 = vsyncadd [#allocation12], 4294966528 }
  0x29   :  { %1020 = dma.done.wait [#allocation15], 768  }
  0x2a   :  { %1021 = vsyncadd [#allocation15], 4294966528  ;;  %v622_v0 = vld [vmem:[#allocation7 + $0x8] sm:$0xff]   ;;  %v583_v1 = vld [vmem:[#allocation7] sm:$0xff]   ;;  %vm188_vm0 = vcmask 261120   ;;  %vm238_vm1 = vcmask 57344  }
  0x2b   :  { %v589_v2 = vunpack.c.h.bf16 %v622_v0  ;;  %v588_v3 = vunpack.c.l.bf16 %v622_v0  ;;  %v179_v4 = vld [vmem:[#allocation5] sm:$0xff]  ;;  %v585_v5 = vunpack.c.h.bf16 %v583_v1  ;;  %v584_v6 = vunpack.c.l.bf16 %v583_v1  ;;  %v178_v7 = vld [vmem:[#allocation2] sm:$0x1]  ;;  %v624_v17 = vld [vmem:[#allocation10 + $0x8] sm:$0xff]   ;;  %s1043_s8 = smov [#allocation21]   ;;  %s513_s21 = sshll.u32 %s1211_s12, 4  ;;  %s514_s21 = int_to_ptr.hbm [resolvable:$true] %s513_s21 }
  0x2c   :  { %573 = vmatpush.xpose.msk.msra.mxu1 %vm188_vm0, %v179_v4  ;;  %282 = vmatpush.msra.mxu2 %v179_v4  ;;  %v623_v16 = vld [vmem:[#allocation8 + $0x8] sm:$0xff]   ;;  %v591_v18 = vld [vmem:[#allocation8] sm:$0xff]   ;;  %v605_v20 = vunpack.c.h.bf16 %v624_v17  ;;  %v604_v22 = vunpack.c.l.bf16 %v624_v17  ;;  %v599_v23 = vld [vmem:[#allocation10] sm:$0xff]   ;;  %vm263_vm6 = vcmask 64512   ;;  %vm463_vm7 = vcmask 253952   ;;  %s511_s1 = sshll.u32 %s1043_s8, 4  ;;  %s512_s1 = int_to_ptr.vmem [resolvable:$true] %s511_s1 }
  0x2d   :  { %204 = vmatpush.msra.mxu0 %v589_v2  ;;  %v597_v19 = vunpack.c.h.bf16 %v623_v16  ;;  %v596_v21 = vunpack.c.l.bf16 %v623_v16  ;;  %v593_v24 = vunpack.c.h.bf16 %v591_v18  ;;  %v601_v25 = vunpack.c.h.bf16 %v599_v23  ;;  %v626_v41 = vld [vmem:[#allocation14 + $0x8] sm:$0xff]   ;;  %v625_v42 = vld [vmem:[#allocation11 + $0x8] sm:$0xff]   ;;  %v615_v47 = vld [vmem:[#allocation14] sm:$0xff]   ;;  %s480_s24 = sshll.u32 %s1208_s9, 4  ;;  %s1044_s25 = smov [#allocation17]   ;;  %s481_s24 = int_to_ptr.hbm [resolvable:$true] %s480_s24 }
  0x2e   :  { %318 = vmatpush.msra.mxu3 %v605_v20  ;;  %v592_v26 = vunpack.c.l.bf16 %v591_v18  ;;  %v600_v39 = vunpack.c.l.bf16 %v599_v23  ;;  %v621_v43 = vunpack.c.h.bf16 %v626_v41  ;;  %v613_v44 = vunpack.c.h.bf16 %v625_v42  ;;  %v607_v48 = vld [vmem:[#allocation11] sm:$0xff]   ;;  %v381_v53 = vld [vmem:[#allocation13 + $0x18] sm:$0xff]  ;;  %v437_v55 = vld [vmem:[#allocation16 + $0x18] sm:$0xff]  ;;  %s478_s27 = sshll.u32 %s1044_s25, 4  ;;  %s524_s29 = sshll.u32 %s1212_s13, 4  ;;  %s479_s27 = int_to_ptr.vmem [resolvable:$true] %s478_s27  ;;  %s525_s29 = int_to_ptr.hbm [resolvable:$true] %s524_s29 }
  0x2f   :  { %205 = vmatpush.msra.mxu0 %v588_v3  ;;  %338 = vmatpush.msrb.mxu2 %v597_v19  ;;  %v620_v45 = vunpack.c.l.bf16 %v626_v41  ;;  %v612_v46 = vunpack.c.l.bf16 %v625_v42  ;;  %v617_v49 = vunpack.c.h.bf16 %v615_v47  ;;  %v609_v50 = vunpack.c.h.bf16 %v607_v48  ;;  %v380_v54 = vld [vmem:[#allocation13 + $0x10] sm:$0xff]  ;;  %v379_v56 = vld [vmem:[#allocation13 + $0x8] sm:$0xff]  ;;  %v378_v0 = vld [vmem:[#allocation13] sm:$0xff]  ;;  %s1045_s2 = smov [#allocation23]   ;;  %s1046_s12 = smov [#allocation24]  }
  0x30   :  { %319 = vmatpush.msra.mxu3 %v604_v22  ;;  %370 = vmatpush.msrb.mxu1 %v613_v44  ;;  %v616_v51 = vunpack.c.l.bf16 %v615_v47  ;;  %v608_v52 = vunpack.c.l.bf16 %v607_v48  ;;  %vm464_vm8 = vsmask.f32 256  ;;  %v466_v61 = vld [vmem:[#allocation17] sm:$0x1]  ;;  %v436_v1 = vld [vmem:[#allocation16 + $0x10] sm:$0xff]  ;;  %v435_v2 = vld [vmem:[#allocation16 + $0x8] sm:$0xff] }
  0x31   :  { %206 = vmatpush.msra.mxu0 %v585_v5  ;;  %339 = vmatpush.msrb.mxu2 %v596_v21  ;;  %vm465_vm9 = vmand %vm463_vm7, %vm464_vm8  ;;  %v434_v3 = vld [vmem:[#allocation16] sm:$0xff]  ;;  %s522_s3 = sshll.u32 %s1045_s2, 4  ;;  %s533_s30 = sshll.u32 %s1046_s12, 4  ;;  %s523_s3 = int_to_ptr.vmem [resolvable:$true] %s522_s3  ;;  %s534_s30 = int_to_ptr.vmem [resolvable:$true] %s533_s30 }
  0x32   :  { %320 = vmatpush.msra.mxu3 %v601_v25  ;;  %371 = vmatpush.msrb.mxu1 %v612_v46  ;;  %s535_s9 = sshll.u32 %s1213_s14, 4  ;;  %s1047_s15 = smov [#allocation18]   ;;  %s536_s9 = int_to_ptr.hbm [resolvable:$true] %s535_s9 }
  0x33   :  { %207 = vmatpush.msra.mxu0 %v584_v6  ;;  %340 = vmatpush.msrb.mxu2 %v593_v24  ;;  %s489_s16 = sshll.u32 %s1047_s15, 4  ;;  %s491_s13 = sshll.u32 %s1209_s10, 4  ;;  %s490_s16 = int_to_ptr.vmem [resolvable:$true] %s489_s16  ;;  %s492_s13 = int_to_ptr.hbm [resolvable:$true] %s491_s13 }
  0x34   :  { %572 = vmatmul.msk.f32.vlgmr.msra.gmra.mxu0 %vm188_vm0, %v178_v7  ;;  %321 = vmatpush.msra.mxu3 %v600_v39  ;;  %s1048_s7 = smov [#allocation20]   ;;  %s502_s14 = sshll.u32 %s1210_s11, 4  ;;  %s503_s14 = int_to_ptr.hbm [resolvable:$true] %s502_s14 }
  0x35   :  { %341 = vmatpush.msrb.mxu2 %v592_v26  ;;  %372 = vmatpush.msrb.mxu1 %v609_v50  ;;  %s500_s6 = sshll.u32 %s1048_s7, 4  ;;  %s501_s6 = int_to_ptr.vmem [resolvable:$true] %s500_s6 }
  0x36   :  { %426 = vmatpush.msrb.mxu3 %v621_v43  ;;  %397 = vmatpush.msrb.mxu0 %v381_v53 }
  0x37   :  { %373 = vmatpush.msrb.mxu1 %v608_v52 }
  0x38   :  { %427 = vmatpush.msrb.mxu3 %v620_v45  ;;  %398 = vmatpush.msrb.mxu0 %v380_v54 }
  0x3a   :  { %428 = vmatpush.msrb.mxu3 %v617_v49  ;;  %399 = vmatpush.msrb.mxu0 %v379_v56 }
  0x3c   :  { %429 = vmatpush.msrb.mxu3 %v616_v51  ;;  %400 = vmatpush.msrb.mxu0 %v378_v0 }
  0xb1   :  { %v209_v8 = vpop.f32.mrf.mxu0 }
  0xb2   :  { %574 = vmatmul.msk.f32.vlgmr.msra.gmra.mxu1 %vm188_vm0, %v209_v8 }
 0x12f   :  { %v235_v9 = vpop.f32.mrf.mxu1 }
 0x130   :  { %v239_v10 = vsel %vm238_vm1, %v235_v9, -inf  ;;  %469 = vst.msk [vmem:[#allocation21] sm:$0x1] %vm238_vm1, %v235_v9 }
 0x131   :  { %240 = vmax.xlane.f32.xlu0 %v239_v10  ;;  %516 = dma.vmem_to_hbm [thread:$0]  %s512_s1, 16, %s514_s21, [#allocation22]  }
 0x1a4   :  { %v241_v11 = vpop.xlane.xlu0 %240 }
 0x1a5   :  { %v242_v12 = vsub.f32 %v235_v9, %v241_v11 }
 0x1a7   :  { %v243_v13 = vmul.f32 1.442695, %v242_v12 }
 0x1a9   :  { %646 = vpow2.f32 %v243_v13 }
 0x1af   :  { %v647_v14 = vpop.eup %646 }
 0x1b0   :  { %v245_v15 = vsel %vm238_vm1, %v647_v14, 0.0 }
 0x1b1   :  { %246 = vadd.xlane.f32.xlu0 %v245_v15 }
 0x224   :  { %v247_v27 = vpop.xlane.xlu0 %246 }
 0x225   :  { %648 = vrcp.f32 %v247_v27  ;;  %v259_v31 = vand.u32 2147483648, %v247_v27  ;;  %v257_v33 = vand.u32 2147483647, %v247_v27  ;;  %vm253_vm3 = vweird.f32 %v247_v27 }
 0x227   :  { %v260_v35 = vor.u32 1.1754944e-38, %v259_v31  ;;  %vm258_vm5 = vcmp.eq.f32.partialorder %v257_v33, 8.507059e+37 }
 0x22b   :  { %v649_v28 = vpop.eup %648 }
 0x22c   :  { %v249_v29 = vmul.f32 %v649_v28, %v247_v27  ;;  %vm254_vm2 = vweird.f32 %v649_v28 }
 0x22d   :  { %vm255_vm4 = vmor %vm253_vm3, %vm254_vm2 }
 0x22e   :  { %v250_v30 = vsub.f32 1.0, %v249_v29 }
 0x230   :  { %v251_v32 = vmul.f32 %v649_v28, %v250_v30 }
 0x232   :  { %v252_v34 = vadd.f32 %v649_v28, %v251_v32 }
 0x234   :  { %v256_v36 = vsel %vm255_vm4, %v649_v28, %v252_v34 }
 0x235   :  { %v261_v37 = vsel %vm258_vm5, %v260_v35, %v256_v36 }
 0x236   :  { %v262_v38 = vmul.f32 %v647_v14, %v261_v37 }
 0x238   :  { %575 = vmatmul.msk.f32.vlgmr.msra.gmra.mxu2 %vm263_vm6, %v262_v38  ;;  %470 = vst.msk [vmem:[#allocation23] sm:$0x1] %vm238_vm1, %v262_v38 }
 0x239   :  { %453 = vmatpush.msra.mxu2 %v437_v55  ;;  %527 = dma.vmem_to_hbm [thread:$0]  %s523_s3, 16, %s525_s29, [#allocation22]  }
 0x23b   :  { %454 = vmatpush.msra.mxu2 %v436_v1 }
 0x23d   :  { %455 = vmatpush.msra.mxu2 %v435_v2 }
 0x23f   :  { %456 = vmatpush.msra.mxu2 %v434_v3 }
 0x240   :  { %577 = vmatmul.msk.f32.vlgmr.msrb.gmra.mxu2 %vm188_vm0, %v178_v7 }
 0x2bb   :  { %v284_v40 = vpop.f32.mrf.mxu2 }
 0x2bc   :  { %472 = vst.msk [vmem:[#allocation24] sm:$0x1] %vm463_vm7, %v284_v40  ;;  %576 = vmatmul.msk.f32.vlgmr.msra.gmra.mxu3 %vm188_vm0, %v284_v40 }
 0x2bd   :  { %538 = dma.vmem_to_hbm [thread:$0]  %s534_s30, 16, %s536_s9, [#allocation25]  }
 0x2c3   :  { %v343_v57 = vpop.f32.mrf.mxu2 }
 0x33f   :  { %v323_v58 = vpop.f32.mrf.mxu3 }
 0x340   :  { %v344_v59 = vadd.f32 %v343_v57, %v323_v58 }
 0x342   :  { %650 = vtanh.f32 %v344_v59 }
 0x348   :  { %v651_v60 = vpop.eup %650 }
 0x349   :  { %578 = vmatmul.msk.f32.vlgmr.msrb.gmra.mxu1 %vm188_vm0, %v651_v60  ;;  %580 = vmatmul.msk.f32.vlgmr.msrb.gmra.mxu3 %vm188_vm0, %v651_v60  ;;  %v462_v62 = vpack.c.bf16 %v651_v60, %v651_v60 }
 0x34b   :  { %v467_v63 = vsel %vm465_vm9, %v462_v62, %v466_v61 }
 0x34c   :  { %468 = vst [vmem:[#allocation17] sm:$0x1] %v467_v63 }
 0x34d   :  { %483 = dma.vmem_to_hbm [thread:$0]  %s479_s27, 16, %s481_s24, [#allocation4]  }
 0x3c6   :  { %v375_v4 = vpop.f32.mrf.mxu1 }
 0x3c7   :  { %579 = vmatmul.msk.f32.vlgmr.msrb.gmra.mxu0 %vm188_vm0, %v375_v4 }
 0x3cc   :  { %v431_v5 = vpop.f32.mrf.mxu3 }
 0x3cd   :  { %581 = vmatmul.msk.f32.vlgmr.msra.gmra.mxu2 %vm188_vm0, %v431_v5 }
 0x444   :  { %v402_v6 = vpop.f32.mrf.mxu0 }
 0x445   :  { %405 = vst [vmem:[#allocation18] sm:$0x1] %v402_v6 }
 0x446   :  { %494 = dma.vmem_to_hbm [thread:$0]  %s490_s16, 16, %s492_s13, [#allocation19]  }
 0x450   :  { %v458_v7 = vpop.f32.mrf.mxu2 }
 0x451   :  { %461 = vst [vmem:[#allocation20] sm:$0x1] %v458_v7 }
 0x452   :  { %505 = dma.vmem_to_hbm [thread:$0]  %s501_s6, 16, %s503_s14, [#allocation19]  }
 0x453   :  { %1022 = dma.done.wait [#allocation4], 16  }
 0x454   :  { %1023 = vsyncadd [#allocation4], 4294967280 }
 0x455   :  { %1024 = dma.done.wait [#allocation19], 32  }
 0x456   :  { %1025 = vsyncadd [#allocation19], 4294967264 }
 0x457   :  { %1026 = dma.done.wait [#allocation22], 32  }
 0x458   :  { %1027 = vsyncadd [#allocation22], 4294967264 }
 0x459   :  { %1028 = dma.done.wait [#allocation25], 16  }
 0x45a   :  { %1029 = vsyncadd [#allocation25], 4294967280 }
 0x45b   :  { %563 = vsyncpa [#allocation3], 1 }
 0x45c   :  { %564 = vsyncpa [#allocation6], 1 }
 0x45d   :  { %565 = vsyncpa [#allocation9], 1 }
 0x45e   :  { %566 = vsyncpa [#allocation12], 1 }
 0x45f   :  { %567 = vsyncpa [#allocation15], 1 }
 0x460   :  { %568 = vsyncpa [#allocation4], 1 }
 0x461   :  { %569 = vsyncpa [#allocation19], 1 }
 0x462   :  { %570 = vsyncpa [#allocation22], 1 }
 0x463   :  { %571 = vsyncpa [#allocation25], 1 }

</bundles_post_ra>
